<compile_context>
chip_gen: v6e
topology: v6e:2x2x1
jax: 0.10.0
libtpu: 0.0.40
codegen_flags: <defaults>
</compile_context>

<pallas_src>
import jax
import jax.numpy as jnp
from jax.experimental import pallas as pl
from jax.experimental.pallas import tpu as pltpu


def _max_relu_kernel(x_ref, we_ref, wo_ref, esel_ref, osel_ref, out_ref):
    # x_ref:    (TB, F)  interleaved pairs [p0e, p0o, p1e, p1o, ...]
    # we/wo:    (1, H)   softplus'd weights for the even / odd pair member
    # esel/osel:(F, H)   exact 0/1 selection matrices (even / odd lanes)
    # out_ref:  (TB, F)  [max_term (H) | relu_term (H)]
    h = we_ref.shape[-1]

    xf = x_ref[...].astype(jnp.float32)                       # promote in-register only

    # Fused stride-2 de-interleave on the idle MXU (exact under HIGHEST).
    xe = jnp.dot(xf, esel_ref[...],
                 precision=jax.lax.Precision.HIGHEST,
                 preferred_element_type=jnp.float32)          # == x[:, 0::2]
    xo = jnp.dot(xf, osel_ref[...],
                 precision=jax.lax.Precision.HIGHEST,
                 preferred_element_type=jnp.float32)          # == x[:, 1::2]

    we = we_ref[...]
    wo = wo_ref[...]

    max_term = jnp.maximum(xe, xo)                            # pair max
    relu_term = (jnp.maximum(xe * we, 0.0) +
                 jnp.maximum(xo * wo, 0.0)) * 0.5             # relu + mean over pair

    out_ref[:, :h] = max_term.astype(out_ref.dtype)
    out_ref[:, h:] = relu_term.astype(out_ref.dtype)


def _choose_tile_rows(b, f, itemsize, vmem_budget_bytes=24 * 1024 * 1024):
    """Rows per batch tile: double-buffered (in + out) tiles within budget."""
    per_row = 4 * f * itemsize                 # 2 buffers x (input + output) rows
    tb = max(8, vmem_budget_bytes // per_row)
    tb = min(tb, 1024)                         # 512-1024 rows ~ measured HBM-roofline sweet spot
    tb -= tb % 8                               # keep sublane-aligned
    tb = min(tb, ((b + 7) // 8) * 8)           # don't over-allocate for small batches
    return max(tb, 8)


def max_relu_pallas(x: jax.Array, raw_weights: jax.Array) -> jax.Array:
    """x: (..., F) with F even. raw_weights: (F//2, 2)."""
    f = x.shape[-1]
    assert f % 2 == 0 and f >= 2
    h = f // 2

    lead_shape = x.shape[:-1]
    b = 1
    for d in lead_shape:
        b *= d

    # Free, metadata-only flatten (row-major contiguous) -- no extra HBM pass.
    x2 = x.reshape(b, f)

    # Parameter transform (matches F.softplus in the PyTorch forward).
    weights = jax.nn.softplus(raw_weights.astype(jnp.float32))        # (H, 2)
    we = weights[:, 0].reshape(1, h)
    wo = weights[:, 1].reshape(1, h)

    # Exact 0/1 selectors for the even / odd member of each consecutive pair.
    pair = jnp.arange(h)
    e_even = jnp.zeros((f, h), jnp.float32).at[2 * pair, pair].set(1.0)
    e_odd = jnp.zeros((f, h), jnp.float32).at[2 * pair + 1, pair].set(1.0)

    tb = _choose_tile_rows(b, f, jnp.dtype(x.dtype).itemsize)
    grid = (pl.cdiv(b, tb),)

    out = pl.pallas_call(
        _max_relu_kernel,
        out_shape=jax.ShapeDtypeStruct((b, f), x.dtype),
        grid_spec=pltpu.PrefetchScalarGridSpec(
            num_scalar_prefetch=0,
            grid=grid,
            in_specs=[
                pl.BlockSpec((tb, f), lambda i: (i, 0)),   # x tile (pipelined)
                pl.BlockSpec((1, h), lambda i: (0, 0)),    # we  (constant block -> fetched once)
                pl.BlockSpec((1, h), lambda i: (0, 0)),    # wo
                pl.BlockSpec((f, h), lambda i: (0, 0)),    # even-lane selector
                pl.BlockSpec((f, h), lambda i: (0, 0)),    # odd-lane selector
            ],
            out_specs=pl.BlockSpec((tb, f), lambda i: (i, 0)),
        ),
        compiler_params=pltpu.CompilerParams(
            dimension_semantics=("parallel",),             # use both TCs on v7x
            vmem_limit_bytes=48 * 1024 * 1024,             # headroom, still < v7x physical
        ),
    )(x2, we, wo, e_even, e_odd)

    return out.reshape(*lead_shape, f)


def _reference(x, raw_weights):
    weights = jax.nn.softplus(raw_weights.astype(jnp.float32))
    xp = x.reshape(*x.shape[:-1], x.shape[-1] // 2, 2)
    max_term = xp.max(axis=-1)
    relu_term = jnp.maximum(xp * weights, 0.0).mean(axis=-1)
    return jnp.concatenate([max_term, relu_term], axis=-1)


if __name__ == "__main__":
    num_features = 32
    key = jax.random.PRNGKey(0)
    x = jax.random.normal(key, (2, 8, num_features), dtype=jnp.float32)

    # Deterministic parameter init: matches nn.Parameter(torch.zeros(F//2, 2)).
    raw_weights = jnp.zeros((num_features // 2, 2), dtype=jnp.float32)

    out = jax.block_until_ready(max_relu_pallas(x, raw_weights))
    ref = _reference(x, raw_weights)

    assert out.shape == (2, 8, num_features)
    assert jnp.allclose(out, ref, atol=1e-5, rtol=1e-5), float(jnp.max(jnp.abs(out - ref)))

    print("KERNEL_OK")
</pallas_src>

<mosaic_0001>
module attributes {stable_mosaic.version = 11 : i64} {
  func.func @_max_relu_kernel(%arg0: i32, %arg1: memref<16x32xf32, #tpu.memory_space<vmem>>, %arg2: memref<1x16xf32, #tpu.memory_space<vmem>>, %arg3: memref<1x16xf32, #tpu.memory_space<vmem>>, %arg4: memref<32x16xf32, #tpu.memory_space<vmem>>, %arg5: memref<32x16xf32, #tpu.memory_space<vmem>>, %arg6: memref<16x32xf32, #tpu.memory_space<vmem>>) attributes {dimension_semantics = [#tpu.dimension_semantics<parallel>], iteration_bounds = array<i64: 1>, scalar_prefetch = 0 : i64, scratch_operands = 0 : i64, tpu.core_type = #tpu.core_type<tc>, window_params = [{transform_indices = @transform_0, window_bounds = array<i64: 16, 32>}, {pipeline_mode = #tpu.pipeline_mode<synchronous>, transform_indices = @transform_1, window_bounds = array<i64: 1, 16>}, {pipeline_mode = #tpu.pipeline_mode<synchronous>, transform_indices = @transform_2, window_bounds = array<i64: 1, 16>}, {pipeline_mode = #tpu.pipeline_mode<synchronous>, transform_indices = @transform_3, window_bounds = array<i64: 32, 16>}, {pipeline_mode = #tpu.pipeline_mode<synchronous>, transform_indices = @transform_4, window_bounds = array<i64: 32, 16>}, {transform_indices = @transform_5, window_bounds = array<i64: 16, 32>}]} {
    %c0 = arith.constant 0 : index
    %c0_0 = arith.constant 0 : index
    %0 = vector.load %arg1[%c0, %c0_0] : memref<16x32xf32, #tpu.memory_space<vmem>>, vector<16x32xf32>
    %c0_1 = arith.constant 0 : index
    %c0_2 = arith.constant 0 : index
    %1 = vector.load %arg4[%c0_1, %c0_2] : memref<32x16xf32, #tpu.memory_space<vmem>>, vector<32x16xf32>
    %cst = arith.constant dense<0.000000e+00> : vector<16x16xf32>
    %2 = tpu.matmul %0, %1, %cst {dimension_numbers = #tpu.dot_dimension_numbers<[1], [0], [0], [1], [0, 0, 1, 1], [], []>, precision = #tpu.contract_precision<fp32>} : vector<16x32xf32>, vector<32x16xf32>, vector<16x16xf32> -> vector<16x16xf32>
    %c0_3 = arith.constant 0 : index
    %c0_4 = arith.constant 0 : index
    %3 = vector.load %arg5[%c0_3, %c0_4] : memref<32x16xf32, #tpu.memory_space<vmem>>, vector<32x16xf32>
    %cst_5 = arith.constant dense<0.000000e+00> : vector<16x16xf32>
    %4 = tpu.matmul %0, %3, %cst_5 {dimension_numbers = #tpu.dot_dimension_numbers<[1], [0], [0], [1], [0, 0, 1, 1], [], []>, precision = #tpu.contract_precision<fp32>} : vector<16x32xf32>, vector<32x16xf32>, vector<16x16xf32> -> vector<16x16xf32>
    %c0_6 = arith.constant 0 : index
    %c0_7 = arith.constant 0 : index
    %5 = vector.load %arg2[%c0_6, %c0_7] : memref<1x16xf32, #tpu.memory_space<vmem>>, vector<1x16xf32>
    %c0_8 = arith.constant 0 : index
    %c0_9 = arith.constant 0 : index
    %6 = vector.load %arg3[%c0_8, %c0_9] : memref<1x16xf32, #tpu.memory_space<vmem>>, vector<1x16xf32>
    %7 = arith.maximumf %2, %4 : vector<16x16xf32>
    %8 = vector.broadcast %5 : vector<1x16xf32> to vector<16x16xf32>
    %9 = arith.mulf %2, %8 : vector<16x16xf32>
    %cst_10 = arith.constant 0.000000e+00 : f32
    %10 = vector.broadcast %cst_10 : f32 to vector<16x16xf32>
    %11 = arith.maximumf %9, %10 : vector<16x16xf32>
    %12 = vector.broadcast %6 : vector<1x16xf32> to vector<16x16xf32>
    %13 = arith.mulf %4, %12 : vector<16x16xf32>
    %cst_11 = arith.constant 0.000000e+00 : f32
    %14 = vector.broadcast %cst_11 : f32 to vector<16x16xf32>
    %15 = arith.maximumf %13, %14 : vector<16x16xf32>
    %16 = arith.addf %11, %15 : vector<16x16xf32>
    %cst_12 = arith.constant 5.000000e-01 : f32
    %17 = vector.broadcast %cst_12 : f32 to vector<16x16xf32>
    %18 = arith.mulf %16, %17 : vector<16x16xf32>
    %c0_13 = arith.constant 0 : index
    %c0_14 = arith.constant 0 : index
    %19 = vector.load %arg6[%c0_13, %c0_14] : memref<16x32xf32, #tpu.memory_space<vmem>>, vector<16x16xf32>
    tpu.vector_store %arg6[%c0_13, %c0_14], %7 {strides = array<i32>} : memref<16x32xf32, #tpu.memory_space<vmem>>, vector<16x16xf32>,
    %c0_15 = arith.constant 0 : index
    %c16 = arith.constant 16 : index
    %20 = vector.load %arg6[%c0_15, %c16] : memref<16x32xf32, #tpu.memory_space<vmem>>, vector<16x16xf32>
    tpu.vector_store %arg6[%c0_15, %c16], %18 {strides = array<i32>} : memref<16x32xf32, #tpu.memory_space<vmem>>, vector<16x16xf32>,
    return
  }
  func.func @transform_0(%arg0: i32) -> (i32, i32) {
    %c0_i32 = arith.constant 0 : i32
    %c0_i32_0 = arith.constant 0 : i32
    return %arg0, %c0_i32 : i32, i32
  }
  func.func @transform_1(%arg0: i32) -> (i32, i32) {
    %c0_i32 = arith.constant 0 : i32
    %c0_i32_0 = arith.constant 0 : i32
    %c0_i32_1 = arith.constant 0 : i32
    return %c0_i32, %c0_i32_0 : i32, i32
  }
  func.func @transform_2(%arg0: i32) -> (i32, i32) {
    %c0_i32 = arith.constant 0 : i32
    %c0_i32_0 = arith.constant 0 : i32
    %c0_i32_1 = arith.constant 0 : i32
    return %c0_i32, %c0_i32_0 : i32, i32
  }
  func.func @transform_3(%arg0: i32) -> (i32, i32) {
    %c0_i32 = arith.constant 0 : i32
    %c0_i32_0 = arith.constant 0 : i32
    %c0_i32_1 = arith.constant 0 : i32
    return %c0_i32, %c0_i32_0 : i32, i32
  }
  func.func @transform_4(%arg0: i32) -> (i32, i32) {
    %c0_i32 = arith.constant 0 : i32
    %c0_i32_0 = arith.constant 0 : i32
    %c0_i32_1 = arith.constant 0 : i32
    return %c0_i32, %c0_i32_0 : i32, i32
  }
  func.func @transform_5(%arg0: i32) -> (i32, i32) {
    %c0_i32 = arith.constant 0 : i32
    %c0_i32_0 = arith.constant 0 : i32
    return %arg0, %c0_i32 : i32, i32
  }
}

</mosaic_0001>

<bundles_post_ra>
// kernel: tpu_custom_call.1
= control target key start
LH: loop header
LB: loop body
LE: loop exit
PB: predicated region body
PF: predicated region fallthrough
CT: control target
= control target key end

     0   :  { %vm27_vm0 = vcmask 261120   ;;  %s1592_s0 = inlined_call_operand.vmem [shape: f32[16,32], index: 0, kind: input, shape index: {}]   ;;  %s1593_s1 = inlined_call_operand.vmem [shape: f32[1,16], index: 1, kind: input, shape index: {}]   ;;  %s1594_s2 = inlined_call_operand.vmem [shape: f32[1,16], index: 2, kind: input, shape index: {}]   ;;  %s1595_s3 = inlined_call_operand.vmem [shape: f32[32,16], index: 3, kind: input, shape index: {}]   ;;  %s1596_s4 = inlined_call_operand.vmem [shape: f32[32,16], index: 4, kind: input, shape index: {}]   ;;  %s1597_s5 = inlined_call_operand.hbm [shape: f32[16,32], index: 5, kind: output, shape index: {}]  }
   0x1   :  { %v26_v0 = vld [vmem:[%s1595_s3 + $0x18] sm:$0xff]  ;;  %v25_v1 = vld [vmem:[%s1595_s3 + $0x10] sm:$0xff]  ;;  %v24_v2 = vld [vmem:[%s1595_s3 + $0x8] sm:$0xff] }
   0x2   :  { %v1427_v3 = vand.u32 4294901760, %v26_v0  ;;  %v1429_v4 = vand.u32 4294901760, %v25_v1  ;;  %v1431_v5 = vand.u32 4294901760, %v24_v2  ;;  %v23_v6 = vld [vmem:[%s1595_s3] sm:$0xff]  ;;  %v22_v8 = vld [vmem:[%s1592_s0 + $0x8] sm:$0xff] }
   0x3   :  { %v21_v7 = vld [vmem:[%s1592_s0] sm:$0xff]  ;;  %v1442_v9 = vand.u32 4294901760, %v23_v6  ;;  %v32_v11 = vsel %vm27_vm0, %v22_v8, 0 }
   0x4   :  { %v29_v10 = vsel %vm27_vm0, %v21_v7, 0  ;;  %1226 = vmatprep.subr.mxu0 %v1427_v3  ;;  %v149_v12 = vsub.f32 %v26_v0, %v1427_v3  ;;  %v1448_v14 = vand.u32 4294901760, %v32_v11  ;;  %v156_v15 = vsub.f32 %v25_v1, %v1429_v4 }
   0x5   :  { %v1446_v13 = vand.u32 4294901760, %v29_v10 }
   0x6   :  { %10 = vsyncpa [#allocation3], 0  ;;  %1227 = vmatpush3.msra.mxu0 %v1427_v3  ;;  %v163_v16 = vsub.f32 %v24_v2, %v1431_v5  ;;  %v170_v17 = vsub.f32 %v23_v6, %v1442_v9  ;;  %v150_v18 = vand.u32 4294901760, %v149_v12  ;;  %v157_v20 = vand.u32 4294901760, %v156_v15  ;;  %v565_v38 = vld [vmem:[%s1596_s4 + $0x18] sm:$0xff]  ;;  %v564_v39 = vld [vmem:[%s1596_s4 + $0x10] sm:$0xff] }
   0x7   :  { %1228 = vmatprep.subr.mxu0 %v1429_v4  ;;  %v1456_v19 = vsub.f32 %v29_v10, %v1446_v13  ;;  %v1459_v21 = vsub.f32 %v32_v11, %v1448_v14  ;;  %1245 = vmatprep.mubr.f32.mxu1 %v1446_v13  ;;  %v1497_v40 = vand.u32 4294901760, %v565_v38  ;;  %v1502_v41 = vand.u32 4294901760, %v564_v39  ;;  %v563_v42 = vld [vmem:[%s1596_s4 + $0x8] sm:$0xff]  ;;  %v562_v43 = vld [vmem:[%s1596_s4] sm:$0xff] }
   0x8   :  { %1229 = vmatpush3.msra.mxu0 %v1429_v4  ;;  %v1463_v22 = vand.u32 4294901760, %v163_v16  ;;  %v1465_v23 = vand.u32 4294901760, %v170_v17  ;;  %v151_v24 = vsub.f32 %v149_v12, %v150_v18  ;;  %v158_v26 = vsub.f32 %v156_v15, %v157_v20 }
   0x9   :  { %1230 = vmatprep.subr.mxu0 %v1431_v5  ;;  %v1469_v25 = vand.u32 4294901760, %v1456_v19  ;;  %v1472_v27 = vand.u32 4294901760, %v1459_v21  ;;  %v681_v44 = vsub.f32 %v565_v38, %v1497_v40  ;;  %v1514_v45 = vand.u32 4294901760, %v563_v42 }
   0xa   :  { %1231 = vmatpush3.msra.mxu0 %v1431_v5  ;;  %v165_v28 = vsub.f32 %v163_v16, %v1463_v22  ;;  %v172_v29 = vsub.f32 %v170_v17, %v1465_v23  ;;  %v152_v30 = vand.u32 4294901760, %v151_v24  ;;  %v159_v32 = vand.u32 4294901760, %v158_v26 }
   0xb   :  { %1232 = vmatprep.subr.mxu0 %v1442_v9  ;;  %v106_v31 = vsub.f32 %v1456_v19, %v1469_v25  ;;  %v116_v33 = vsub.f32 %v1459_v21, %v1472_v27  ;;  %v688_v46 = vsub.f32 %v564_v39, %v1502_v41  ;;  %v1520_v47 = vand.u32 4294901760, %v562_v43 }
   0xc   :  { %1233 = vmatpush3.msra.mxu0 %v1442_v9  ;;  %1237 = vmatprep.subr.mxu1 %v152_v30  ;;  %v166_v36 = vand.u32 4294901760, %v165_v28  ;;  %v173_v37 = vand.u32 4294901760, %v172_v29  ;;  %v1524_v48 = vand.u32 4294901760, %v681_v44  ;;  %v695_v49 = vsub.f32 %v563_v42, %v1514_v45 }
   0xd   :  { %v1483_v34 = vand.u32 4294901760, %v106_v31  ;;  %1248 = vmatprep.subr.mxu0 %v149_v12  ;;  %v1485_v35 = vand.u32 4294901760, %v116_v33  ;;  %1238 = vmatpush3.msra.mxu1 %v152_v30  ;;  %v689_v50 = vand.u32 4294901760, %v688_v46  ;;  %v702_v51 = vsub.f32 %v562_v43, %v1520_v47 }
   0xe   :  { %1239 = vmatprep.subr.mxu1 %v159_v32  ;;  %v683_v52 = vsub.f32 %v681_v44, %v1524_v48  ;;  %v696_v53 = vand.u32 4294901760, %v695_v49  ;;  %vm1122_vm1 = vcmask 130048   ;;  %vm1133_vm2 = vcmask 261248  }
   0xf   :  { %1234 = vmatprep.mubr.f32.mxu0 %v1483_v34  ;;  %1240 = vmatpush3.msra.mxu1 %v159_v32  ;;  %v690_v54 = vsub.f32 %v688_v46, %v689_v50  ;;  %v703_v55 = vand.u32 4294901760, %v702_v51 }
  0x10   :  { %1235 = vmatmul.mubr.f32.vlgmr.msra.gmra.mxu0 %v1485_v35  ;;  %1241 = vmatprep.subr.mxu1 %v166_v36  ;;  %v684_v56 = vand.u32 4294901760, %v683_v52  ;;  %v697_v57 = vsub.f32 %v695_v49, %v696_v53 }
  0x11   :  { %1249 = vmatpush3.msra.mxu0 %v149_v12  ;;  %1242 = vmatpush3.msra.mxu1 %v166_v36  ;;  %v691_v58 = vand.u32 4294901760, %v690_v54  ;;  %v704_v59 = vsub.f32 %v702_v51, %v703_v55 }
  0x12   :  { %1250 = vmatprep.subr.mxu0 %v156_v15  ;;  %1243 = vmatprep.subr.mxu1 %v173_v37  ;;  %v698_v60 = vand.u32 4294901760, %v697_v57 }
  0x13   :  { %1251 = vmatpush3.msra.mxu0 %v156_v15  ;;  %1244 = vmatpush3.msra.mxu1 %v173_v37  ;;  %v705_v61 = vand.u32 4294901760, %v704_v59  ;;  %v1153_v37 = vld [vmem:[%s1594_s2] ss:$0 sm:$0xff]  ;;  %s1384_s2 = smov 16  }
  0x14   :  { %1252 = vmatprep.subr.mxu0 %v163_v16  ;;  %1246 = vmatmul.mubr.f32.vlgmr.msra.gmra.mxu1 %v1448_v14 }
  0x15   :  { %1253 = vmatpush3.msra.mxu0 %v163_v16  ;;  %1259 = vmatprep.subr.mxu1 %v1427_v3 }
  0x16   :  { %1254 = vmatprep.subr.mxu0 %v170_v17  ;;  %1256 = vmatprep.mubr.f32.mxu0 %v1456_v19 }
  0x17   :  { %1255 = vmatpush3.msra.mxu0 %v170_v17  ;;  %1260 = vmatpush3.msra.mxu1 %v1427_v3 }
  0x18   :  { %1257 = vmatmul.mubr.f32.vlgmr.msra.gmra.mxu0 %v1459_v21  ;;  %1261 = vmatprep.subr.mxu1 %v1429_v4 }
  0x19   :  { %1270 = vmatprep.subr.mxu0 %v150_v18  ;;  %1262 = vmatpush3.msra.mxu1 %v1429_v4 }
  0x1a   :  { %1271 = vmatpush3.msra.mxu0 %v150_v18  ;;  %1263 = vmatprep.subr.mxu1 %v1431_v5 }
  0x1b   :  { %1272 = vmatprep.subr.mxu0 %v157_v20  ;;  %1264 = vmatpush3.msra.mxu1 %v1431_v5 }
  0x1c   :  { %1273 = vmatpush3.msra.mxu0 %v157_v20  ;;  %1265 = vmatprep.subr.mxu1 %v1442_v9 }
  0x1d   :  { %1274 = vmatprep.subr.mxu0 %v1463_v22  ;;  %1266 = vmatpush3.msra.mxu1 %v1442_v9 }
  0x1e   :  { %1267 = vmatprep.mubr.f32.mxu1 %v1469_v25  ;;  %1275 = vmatpush3.msra.mxu0 %v1463_v22 }
  0x1f   :  { %1268 = vmatmul.mubr.f32.vlgmr.msra.gmra.mxu1 %v1472_v27  ;;  %1276 = vmatprep.subr.mxu0 %v1465_v23 }
  0x20   :  { %1281 = vmatprep.subr.mxu1 %v1427_v3  ;;  %1277 = vmatpush3.msra.mxu0 %v1465_v23 }
  0x21   :  { %1278 = vmatprep.mubr.f32.mxu0 %v1446_v13  ;;  %1282 = vmatpush3.msra.mxu1 %v1427_v3 }
  0x22   :  { %1279 = vmatmul.mubr.f32.vlgmr.msra.gmra.mxu0 %v1448_v14  ;;  %1283 = vmatprep.subr.mxu1 %v1429_v4 }
  0x23   :  { %1292 = vmatprep.subr.mxu0 %v1497_v40  ;;  %1284 = vmatpush3.msra.mxu1 %v1429_v4 }
  0x24   :  { %1293 = vmatpush3.msra.mxu0 %v1497_v40  ;;  %1285 = vmatprep.subr.mxu1 %v1431_v5 }
  0x25   :  { %1294 = vmatprep.subr.mxu0 %v1502_v41  ;;  %1286 = vmatpush3.msra.mxu1 %v1431_v5 }
  0x26   :  { %1295 = vmatpush3.msra.mxu0 %v1502_v41  ;;  %1287 = vmatprep.subr.mxu1 %v1442_v9 }
  0x27   :  { %1296 = vmatprep.subr.mxu0 %v1514_v45  ;;  %1288 = vmatpush3.msra.mxu1 %v1442_v9 }
  0x28   :  { %1289 = vmatprep.mubr.f32.mxu1 %v1446_v13  ;;  %1297 = vmatpush3.msra.mxu0 %v1514_v45 }
  0x29   :  { %1290 = vmatmul.mubr.f32.vlgmr.msra.gmra.mxu1 %v1448_v14  ;;  %1298 = vmatprep.subr.mxu0 %v1520_v47 }
  0x2a   :  { %1303 = vmatprep.subr.mxu1 %v684_v56  ;;  %1299 = vmatpush3.msra.mxu0 %v1520_v47 }
  0x2b   :  { %1304 = vmatpush3.msra.mxu1 %v684_v56  ;;  %1300 = vmatprep.mubr.f32.mxu0 %v1483_v34 }
  0x2c   :  { %1305 = vmatprep.subr.mxu1 %v691_v58  ;;  %1314 = vmatprep.subr.mxu0 %v681_v44 }
  0x2d   :  { %1301 = vmatmul.mubr.f32.vlgmr.msra.gmra.mxu0 %v1485_v35  ;;  %1306 = vmatpush3.msra.mxu1 %v691_v58 }
  0x2e   :  { %1315 = vmatpush3.msra.mxu0 %v681_v44  ;;  %1307 = vmatprep.subr.mxu1 %v698_v60 }
  0x2f   :  { %1316 = vmatprep.subr.mxu0 %v688_v46  ;;  %1308 = vmatpush3.msra.mxu1 %v698_v60 }
  0x30   :  { %1317 = vmatpush3.msra.mxu0 %v688_v46  ;;  %1309 = vmatprep.subr.mxu1 %v705_v61 }
  0x31   :  { %1318 = vmatprep.subr.mxu0 %v695_v49  ;;  %1310 = vmatpush3.msra.mxu1 %v705_v61 }
  0x32   :  { %1311 = vmatprep.mubr.f32.mxu1 %v1446_v13  ;;  %1319 = vmatpush3.msra.mxu0 %v695_v49 }
  0x33   :  { %1312 = vmatmul.mubr.f32.vlgmr.msra.gmra.mxu1 %v1448_v14  ;;  %1320 = vmatprep.subr.mxu0 %v702_v51 }
  0x34   :  { %1325 = vmatprep.subr.mxu1 %v1497_v40  ;;  %1321 = vmatpush3.msra.mxu0 %v702_v51 }
  0x35   :  { %1322 = vmatprep.mubr.f32.mxu0 %v1456_v19  ;;  %1326 = vmatpush3.msra.mxu1 %v1497_v40 }
  0x36   :  { %1323 = vmatmul.mubr.f32.vlgmr.msra.gmra.mxu0 %v1459_v21  ;;  %1327 = vmatprep.subr.mxu1 %v1502_v41 }
  0x37   :  { %1336 = vmatprep.subr.mxu0 %v1524_v48  ;;  %1328 = vmatpush3.msra.mxu1 %v1502_v41 }
  0x38   :  { %1337 = vmatpush3.msra.mxu0 %v1524_v48  ;;  %1329 = vmatprep.subr.mxu1 %v1514_v45 }
  0x39   :  { %1338 = vmatprep.subr.mxu0 %v689_v50  ;;  %1330 = vmatpush3.msra.mxu1 %v1514_v45 }
  0x3a   :  { %1339 = vmatpush3.msra.mxu0 %v689_v50  ;;  %1331 = vmatprep.subr.mxu1 %v1520_v47 }
  0x3b   :  { %1340 = vmatprep.subr.mxu0 %v696_v53  ;;  %1332 = vmatpush3.msra.mxu1 %v1520_v47 }
  0x3c   :  { %1333 = vmatprep.mubr.f32.mxu1 %v1469_v25  ;;  %1341 = vmatpush3.msra.mxu0 %v696_v53 }
  0x3d   :  { %1334 = vmatmul.mubr.f32.vlgmr.msra.gmra.mxu1 %v1472_v27  ;;  %1342 = vmatprep.subr.mxu0 %v703_v55 }
  0x3e   :  { %1347 = vmatprep.subr.mxu1 %v1497_v40  ;;  %1343 = vmatpush3.msra.mxu0 %v703_v55 }
  0x3f   :  { %1344 = vmatprep.mubr.f32.mxu0 %v1446_v13  ;;  %1348 = vmatpush3.msra.mxu1 %v1497_v40 }
  0x40   :  { %1345 = vmatmul.mubr.f32.vlgmr.msra.gmra.mxu0 %v1448_v14  ;;  %1349 = vmatprep.subr.mxu1 %v1502_v41 }
  0x41   :  { %1355 = vmatprep.mubr.f32.mxu1 %v1446_v13  ;;  %1350 = vmatpush3.msra.mxu1 %v1502_v41  ;;  %v1152_v41 = vld [vmem:[%s1593_s1] ss:$0 sm:$0xff]  ;;  %s1385_s1 = smov [#allocation2]  }
  0x42   :  { %1351 = vmatprep.subr.mxu1 %v1514_v45  ;;  %s1141_s14 = sshll.u32 %s1385_s1, 4  ;;  %s1142_s14 = int_to_ptr.vmem [resolvable:$true] %s1141_s14 }
  0x43   :  { %1352 = vmatpush3.msra.mxu1 %v1514_v45  ;;  %s1362_s15 = scalar_lea.vmem %s1142_s14, 256  ;;  %p1367_p1 = scmp.lt.s32.totalorder %s1142_s14, %s1142_s14 }
  0x44   :  { %1353 = vmatprep.subr.mxu1 %v1520_v47  ;;  %p1363_p0 = scmp.ne.s32.totalorder %s1142_s14, %s1362_s15  ;;  %p1368_p2 = scmp.lt.s32.totalorder %s1362_s15, %s1362_s15 }
  0x45   :  { %1354 = vmatpush3.msra.mxu1 %v1520_v47 }
  0x46   :  { %1356 = vmatmul.mubr.f32.vlgmr.msra.gmra.mxu1 %v1448_v14  ;;  %p1369_p3 = por %p1368_p2, %p1367_p1 }
  0x48   :  { %p1370_p4 = pnand %p1369_p3, %p1363_p0 }
  0xd0   :  { %v1236_v62 = vpop.f32.mrf.mxu0 }
  0xd2   :  { %v109_v63 = vpop.f32.mrf.mxu0 }
  0xd4   :  { %v1247_v0 = vpop.f32.mrf.mxu1 }
  0xd5   :  { %v217_v17 = vadd.f32 %v1247_v0, %v1236_v62 }
  0xd6   :  { %v210_v2 = vpop.f32.mrf.mxu1 }
  0xd7   :  { %v211_v13 = vadd.f32 %v210_v2, %v109_v63 }
  0xd8   :  { %v1258_v1 = vpop.f32.mrf.mxu0 }
  0xd9   :  { %v304_v22 = vadd.f32 %v1258_v1, %v217_v17 }
  0xda   :  { %v296_v3 = vpop.f32.mrf.mxu0 }
  0xdb   :  { %v297_v19 = vadd.f32 %v296_v3, %v211_v13 }
  0xdf   :  { %v1269_v4 = vpop.f32.mrf.mxu1 }
  0xe0   :  { %v389_v27 = vadd.f32 %v1269_v4, %v304_v22 }
  0xe1   :  { %v380_v6 = vpop.f32.mrf.mxu1 }
  0xe2   :  { %v1280_v5 = vpop.f32.mrf.mxu0  ;;  %v381_v23 = vadd.f32 %v380_v6, %v297_v19 }
  0xe3   :  { %v478_v33 = vadd.f32 %v1280_v5, %v389_v27 }
  0xe4   :  { %v471_v7 = vpop.f32.mrf.mxu0 }
  0xe5   :  { %v472_v30 = vadd.f32 %v471_v7, %v381_v23 }
  0xe9   :  { %v1291_v8 = vpop.f32.mrf.mxu1 }
  0xea   :  { %v559_v38 = vadd.f32 %v1291_v8, %v478_v33 }
  0xeb   :  { %v552_v10 = vpop.f32.mrf.mxu1 }
  0xec   :  { %v553_v34 = vadd.f32 %v552_v10, %v472_v30  ;;  %v1105_v47 = vmul.f32 %v1152_v41, %v559_v38 }
  0xed   :  { %v1302_v9 = vpop.f32.mrf.mxu0 }
  0xee   :  { %v1104_v43 = vmul.f32 %v1152_v41, %v553_v34  ;;  %v1107_v53 = vmax.f32 %v1105_v47, 0.0 }
  0xef   :  { %v641_v11 = vpop.f32.mrf.mxu0 }
  0xf0   :  { %v1106_v50 = vmax.f32 %v1104_v43, 0.0 }
  0xf3   :  { %v1313_v12 = vpop.f32.mrf.mxu1 }
  0xf4   :  { %v749_v14 = vadd.f32 %v1313_v12, %v1302_v9 }
  0xf5   :  { %v742_v15 = vpop.f32.mrf.mxu1 }
  0xf6   :  { %v1324_v16 = vpop.f32.mrf.mxu0  ;;  %v743_v20 = vadd.f32 %v742_v15, %v641_v11 }
  0xf7   :  { %v836_v24 = vadd.f32 %v1324_v16, %v749_v14 }
  0xf8   :  { %v828_v21 = vpop.f32.mrf.mxu0 }
  0xf9   :  { %v829_v28 = vadd.f32 %v828_v21, %v743_v20 }
  0xfd   :  { %v1335_v18 = vpop.f32.mrf.mxu1 }
  0xfe   :  { %v921_v29 = vadd.f32 %v1335_v18, %v836_v24 }
  0xff   :  { %v912_v25 = vpop.f32.mrf.mxu1 }
 0x100   :  { %v1346_v26 = vpop.f32.mrf.mxu0  ;;  %v913_v31 = vadd.f32 %v912_v25, %v829_v28 }
 0x101   :  { %v1010_v35 = vadd.f32 %v1346_v26, %v921_v29 }
 0x102   :  { %v1003_v32 = vpop.f32.mrf.mxu0 }
 0x103   :  { %v1004_v39 = vadd.f32 %v1003_v32, %v913_v31 }
 0x106   :  { %v1357_v36 = vpop.f32.mrf.mxu1 }
 0x107   :  { %v1091_v40 = vadd.f32 %v1357_v36, %v1010_v35 }
 0x108   :  { %v1084_v42 = vpop.f32.mrf.mxu1 }
 0x109   :  { %v1097_v44 = vmax.f32 %v559_v38, %v1091_v40  ;;  %v1115_v45 = vmul.f32 %v1153_v37, %v1091_v40  ;;  %v1085_v46 = vadd.f32 %v1084_v42, %v1004_v39 }
 0x10b   :  { %v1096_v48 = vmax.f32 %v553_v34, %v1085_v46  ;;  %v1114_v49 = vmul.f32 %v1153_v37, %v1085_v46  ;;  %1124 = vst.msk [vmem:[#allocation2 + $0x8] sm:$0xff] %vm1122_vm1, %v1097_v44  ;;  %v1117_v51 = vmax.f32 %v1115_v45, 0.0 }
 0x10d   :  { %v1116_v52 = vmax.f32 %v1114_v49, 0.0  ;;  %1123 = vst.msk [vmem:[#allocation2] sm:$0xff] %vm1122_vm1, %v1096_v48  ;;  %v1119_v56 = vadd.f32 %v1117_v51, %v1107_v53 }
 0x10f   :  { %v1118_v54 = vadd.f32 %v1116_v52, %v1106_v50  ;;  %v1121_v57 = vmul.f32 0.5, %v1119_v56 }
 0x111   :  { %v1120_v55 = vmul.f32 0.5, %v1118_v54 }
 0x113   :  { %1127 = vrot.lane.b32.xlu0 %v1120_v55, %s1384_s2 }
 0x117   :  { %1129 = vrot.lane.b32.xlu0 %v1121_v57, %s1384_s2 }
 0x185   :  { %v1128_v58 = vpop.permute.xlu0 %1127 }
 0x186   :  { %1134 = vst.msk [vmem:[#allocation2] sm:$0xff] %vm1133_vm2, %v1128_v58 }
 0x189   :  { %v1130_v59 = vpop.permute.xlu0 %1129 }
 0x18a   :  { %1135 = vst.msk [vmem:[#allocation2 + $0x8] sm:$0xff] %vm1133_vm2, %v1130_v59 }
 0x18b   :  { %1373 = shalt.err (!%p1370_p4)
}
 0x18c   :  { %s1386_s16 = smov 128   ;;  %s1387_s17 = smov 8  }
 0x18d   :  { %1147 = dma.vmem_to_hbm [thread:$0]  %s1142_s14, 256, %s1597_s5, [#allocation3], %s1386_s16, %s1386_s16, %s1387_s17  }
 0x18e   :  { %1382 = dma.done.wait [#allocation3], 256  }
 0x18f   :  { %1383 = vsyncadd [#allocation3], 4294967040 }
 0x190   :  { %1151 = vsyncpa [#allocation3], 1 }

</bundles_post_ra>
